<compile_context>
chip_gen: v7x
topology: tpu7x:2x2x1
jax: 0.10.0
libtpu: 0.0.40
codegen_flags: <defaults>
</compile_context>

<pallas_src>
import functools

import jax
import jax.numpy as jnp
from jax.experimental import pallas as pl
from jax.experimental.pallas import tpu as pltpu


def _layernorm_kernel(x_ref, *rest, eps, n_elems, affine):
    """Per-sample LayerNorm over a (TN, D) block (one sample per row)."""
    if affine:
        scale_ref, bias_ref, o_ref = rest
    else:
        (o_ref,) = rest

    x = x_ref[...].astype(jnp.float32)                      # (TN, D)

    # Single pass: mean and unbiased variance from sum / sum-of-squares.
    s1 = jnp.sum(x, axis=1, keepdims=True)                  # (TN, 1)
    s2 = jnp.sum(x * x, axis=1, keepdims=True)              # (TN, 1)
    mean = s1 * (1.0 / n_elems)
    # torch.Tensor.std default is unbiased (divide by N-1).
    # NOTE: n_elems == 1 yields inf/nan, same as the torch module.
    var = (s2 - s1 * mean) * (1.0 / (n_elems - 1))
    var = jnp.maximum(var, 0.0)                             # guard FP rounding
    std = jnp.sqrt(var)
    # eps is added to std (outside the sqrt), matching the reference module.
    # This is a per-sample (TN, 1) quantity, so the exact divide is negligible.
    inv = 1.0 / (std + eps)

    y = (x - mean) * inv
    if affine:
        y = y * scale_ref[...].astype(jnp.float32) + bias_ref[...].astype(jnp.float32)

    o_ref[...] = y.astype(o_ref.dtype)


def _choose_block_rows(n_rows, row_bytes, budget_bytes=3 << 20):
    """Samples per grid step: ~3 MiB input blocks, sublane-aligned rows.

    2 input + 2 output double-buffered blocks stay well under v5e's 16 MiB
    default scoped VMEM (and far under v6e's 128 MiB / v7x's 64 MiB). The row
    count is capped so the 'parallel' batch grid keeps >= 2 steps when the
    batch allows it (lets v7x shard across both TensorCores).
    """
    if n_rows <= 8:
        return n_rows                        # single (partial) sublane tile
    tn = budget_bytes // max(row_bytes, 1)
    tn = min(tn, (n_rows + 1) // 2)          # keep at least 2 grid steps
    tn = max(8, (tn // 8) * 8)               # sublane-aligned block rows
    return min(tn, n_rows)


def layer_norm(x, gamma=None, beta=None, *, eps=1e-5, affine=True):
    """LayerNorm matching the PyTorch reference module. x is (N, C, ...)."""
    N = x.shape[0]
    feat_shape = x.shape[1:]
    C = feat_shape[0]
    D = 1
    for d in feat_shape:
        D *= d

    # Lane-dense layout: all non-batch dims on the lane axis (free bitcast).
    x2 = x.reshape(N, D)

    # TODO(synk): for D too large to fit one row block in VMEM, a two-pass
    # (stats then normalize) grid over the feature axis would be needed.
    tn = _choose_block_rows(N, D * x.dtype.itemsize)
    grid = (pl.cdiv(N, tn),)

    row_spec = pl.BlockSpec((tn, D), lambda n: (n, 0))

    operands = [x2]
    in_specs = [row_spec]
    if affine:
        rep = D // C  # spatial size per channel
        # Pre-broadcast per-channel params to one lane-dense row (done once,
        # outside the kernel); inside the kernel they broadcast over sublanes.
        scale_row = jnp.repeat(gamma, rep).reshape(1, D)
        bias_row = jnp.repeat(beta, rep).reshape(1, D)
        param_spec = pl.BlockSpec((1, D), lambda n: (0, 0))
        operands += [scale_row, bias_row]
        in_specs += [param_spec, param_spec]

    kernel = functools.partial(
        _layernorm_kernel, eps=eps, n_elems=D, affine=affine
    )

    out2 = pl.pallas_call(
        kernel,
        out_shape=jax.ShapeDtypeStruct((N, D), x.dtype),
        grid_spec=pltpu.PrefetchScalarGridSpec(
            num_scalar_prefetch=0,
            grid=grid,
            in_specs=in_specs,
            out_specs=row_spec,
        ),
        compiler_params=pltpu.CompilerParams(
            dimension_semantics=("parallel",),
            vmem_limit_bytes=32 * 1024 * 1024,
        ),
    )(*operands)

    return out2.reshape(x.shape)


def _reference(x, gamma=None, beta=None, eps=1e-5, affine=True):
    N = x.shape[0]
    flat = x.reshape(N, -1)
    mean = flat.mean(axis=1).reshape(N, 1, 1, 1)
    std = flat.std(axis=1, ddof=1).reshape(N, 1, 1, 1)  # unbiased, like torch
    y = (x - mean) / (std + eps)
    if affine:
        C = gamma.shape[0]
        y = gamma.reshape(1, C, 1, 1) * y + beta.reshape(1, C, 1, 1)
    return y


if __name__ == "__main__":
    key = jax.random.PRNGKey(0)
    kx, kg = jax.random.split(key)

    N, C, H, W = 2, 4, 16, 16
    x = jax.random.normal(kx, (N, C, H, W), dtype=jnp.float32)
    # gamma ~ uniform_() in [0, 1), beta = zeros (deterministic init)
    gamma = jax.random.uniform(kg, (C,), dtype=jnp.float32)
    beta = jnp.zeros((C,), dtype=jnp.float32)

    out = layer_norm(x, gamma, beta, eps=1e-5, affine=True)
    out = jax.block_until_ready(out)
    ref = _reference(x, gamma, beta, eps=1e-5, affine=True)
    assert out.shape == x.shape
    assert jnp.allclose(out, ref, atol=1e-4, rtol=1e-4), "affine mismatch vs reference"

    out_na = layer_norm(x, eps=1e-5, affine=False)
    out_na = jax.block_until_ready(out_na)
    ref_na = _reference(x, eps=1e-5, affine=False)
    assert jnp.allclose(out_na, ref_na, atol=1e-4, rtol=1e-4), "non-affine mismatch"

    print("KERNEL_OK")
</pallas_src>

<mosaic_0001>
module attributes {stable_mosaic.version = 11 : i64} {
  func.func @_layernorm_kernel(%arg0: i32, %arg1: memref<2x1024xf32, #tpu.memory_space<vmem>>, %arg2: memref<1x1024xf32, #tpu.memory_space<vmem>>, %arg3: memref<1x1024xf32, #tpu.memory_space<vmem>>, %arg4: memref<2x1024xf32, #tpu.memory_space<vmem>>) attributes {dimension_semantics = [#tpu.dimension_semantics<parallel>], iteration_bounds = array<i64: 1>, scalar_prefetch = 0 : i64, scratch_operands = 0 : i64, tpu.core_type = #tpu.core_type<tc>, window_params = [{transform_indices = @transform_0, window_bounds = array<i64: 2, 1024>}, {pipeline_mode = #tpu.pipeline_mode<synchronous>, transform_indices = @transform_1, window_bounds = array<i64: 1, 1024>}, {pipeline_mode = #tpu.pipeline_mode<synchronous>, transform_indices = @transform_2, window_bounds = array<i64: 1, 1024>}, {transform_indices = @transform_3, window_bounds = array<i64: 2, 1024>}]} {
    %c0 = arith.constant 0 : index
    %c0_0 = arith.constant 0 : index
    %0 = vector.load %arg1[%c0, %c0_0] : memref<2x1024xf32, #tpu.memory_space<vmem>>, vector<2x1024xf32>
    %cst = arith.constant dense<0.000000e+00> : vector<2xf32>
    %1 = vector.multi_reduction <add>, %0, %cst [1] : vector<2x1024xf32> to vector<2xf32>
    %2 = vector.shape_cast %1 : vector<2xf32> to vector<2x1xf32>
    %3 = arith.mulf %0, %0 : vector<2x1024xf32>
    %cst_1 = arith.constant dense<0.000000e+00> : vector<2xf32>
    %4 = vector.multi_reduction <add>, %3, %cst_1 [1] : vector<2x1024xf32> to vector<2xf32>
    %5 = vector.shape_cast %4 : vector<2xf32> to vector<2x1xf32>
    %cst_2 = arith.constant 9.765625E-4 : f32
    %6 = vector.broadcast %cst_2 : f32 to vector<2x1xf32>
    %7 = arith.mulf %2, %6 : vector<2x1xf32>
    %8 = arith.mulf %2, %7 : vector<2x1xf32>
    %9 = arith.subf %5, %8 : vector<2x1xf32>
    %cst_3 = arith.constant 9.77517105E-4 : f32
    %10 = vector.broadcast %cst_3 : f32 to vector<2x1xf32>
    %11 = arith.mulf %9, %10 : vector<2x1xf32>
    %cst_4 = arith.constant 0.000000e+00 : f32
    %12 = vector.broadcast %cst_4 : f32 to vector<2x1xf32>
    %13 = arith.maximumf %11, %12 : vector<2x1xf32>
    %14 = math.sqrt %13 : vector<2x1xf32>
    %cst_5 = arith.constant 9.99999974E-6 : f32
    %15 = vector.broadcast %cst_5 : f32 to vector<2x1xf32>
    %16 = arith.addf %14, %15 : vector<2x1xf32>
    %cst_6 = arith.constant 1.000000e+00 : f32
    %17 = vector.broadcast %cst_6 : f32 to vector<2x1xf32>
    %18 = arith.divf %17, %16 : vector<2x1xf32>
    %19 = vector.broadcast %7 : vector<2x1xf32> to vector<2x1024xf32>
    %20 = arith.subf %0, %19 : vector<2x1024xf32>
    %21 = vector.broadcast %18 : vector<2x1xf32> to vector<2x1024xf32>
    %22 = arith.mulf %20, %21 : vector<2x1024xf32>
    %c0_7 = arith.constant 0 : index
    %c0_8 = arith.constant 0 : index
    %23 = vector.load %arg2[%c0_7, %c0_8] : memref<1x1024xf32, #tpu.memory_space<vmem>>, vector<1x1024xf32>
    %24 = vector.broadcast %23 : vector<1x1024xf32> to vector<2x1024xf32>
    %25 = arith.mulf %22, %24 : vector<2x1024xf32>
    %c0_9 = arith.constant 0 : index
    %c0_10 = arith.constant 0 : index
    %26 = vector.load %arg3[%c0_9, %c0_10] : memref<1x1024xf32, #tpu.memory_space<vmem>>, vector<1x1024xf32>
    %27 = vector.broadcast %26 : vector<1x1024xf32> to vector<2x1024xf32>
    %28 = arith.addf %25, %27 : vector<2x1024xf32>
    %c0_11 = arith.constant 0 : index
    %c0_12 = arith.constant 0 : index
    %29 = vector.load %arg4[%c0_11, %c0_12] : memref<2x1024xf32, #tpu.memory_space<vmem>>, vector<2x1024xf32>
    tpu.vector_store %arg4[%c0_11, %c0_12], %28 {strides = array<i32>} : memref<2x1024xf32, #tpu.memory_space<vmem>>, vector<2x1024xf32>,
    return
  }
  func.func @transform_0(%arg0: i32) -> (i32, i32) {
    %c0_i32 = arith.constant 0 : i32
    %c0_i32_0 = arith.constant 0 : i32
    return %arg0, %c0_i32 : i32, i32
  }
  func.func @transform_1(%arg0: i32) -> (i32, i32) {
    %c0_i32 = arith.constant 0 : i32
    %c0_i32_0 = arith.constant 0 : i32
    %c0_i32_1 = arith.constant 0 : i32
    return %c0_i32, %c0_i32_0 : i32, i32
  }
  func.func @transform_2(%arg0: i32) -> (i32, i32) {
    %c0_i32 = arith.constant 0 : i32
    %c0_i32_0 = arith.constant 0 : i32
    %c0_i32_1 = arith.constant 0 : i32
    return %c0_i32, %c0_i32_0 : i32, i32
  }
  func.func @transform_3(%arg0: i32) -> (i32, i32) {
    %c0_i32 = arith.constant 0 : i32
    %c0_i32_0 = arith.constant 0 : i32
    return %arg0, %c0_i32 : i32, i32
  }
}

</mosaic_0001>

<bundles_post_ra>
// kernel: tpu_custom_call.1
= control target key start
LH: loop header
LB: loop body
LE: loop exit
PB: predicated region body
PF: predicated region fallthrough
CT: control target
= control target key end

     0   :  { %8 = vsyncpa [#allocation3], 0  ;;  %s618_s0 = inlined_call_operand.hbm [shape: f32[2,1024], index: 0, kind: input, shape index: {}]   ;;  %s619_s1 = inlined_call_operand.hbm [shape: f32[1,1024], index: 1, kind: input, shape index: {}]   ;;  %s620_s2 = inlined_call_operand.hbm [shape: f32[1,1024], index: 2, kind: input, shape index: {}]   ;;  %s621_s3 = inlined_call_operand.hbm [shape: f32[2,1024], index: 3, kind: output, shape index: {}]  }
   0x1   :  { %9 = vsyncpa [#allocation6], 0 }
   0x2   :  { %10 = vsyncpa [#allocation4], 0  ;;  %s482_s12 = smov [#allocation5]   ;;  %s483_s14 = smov [#allocation2]  }
   0x3   :  { %s27_s13 = sshll.u32 %s482_s12, 4  ;;  %s17_s15 = sshll.u32 %s483_s14, 4  ;;  %s28_s13 = int_to_ptr.vmem [resolvable:$true] %s27_s13  ;;  %s18_s15 = int_to_ptr.vmem [resolvable:$true] %s17_s15 }
   0x4   :  { %s388_s18 = scalar_lea.hbm %s619_s1, 128 }
   0x5   :  { %p389_p0 = scmp.ne.s32.totalorder %s619_s1, %s388_s18  ;;  %p392_p1 = scmp.lt.u32.totalorder %s388_s18, %s619_s1 }
   0x7   :  { %p394_p2 = pnand %p392_p1, %p389_p0 }
   0x9   :  { %397 = shalt.err (!%p394_p2)
}
   0xa   :  { %s398_s23 = scalar_lea.vmem %s28_s13, 128  ;;  %p403_p4 = scmp.lt.s32.totalorder %s28_s13, %s28_s13 }
   0xb   :  { %p399_p3 = scmp.ne.s32.totalorder %s28_s13, %s398_s23  ;;  %p404_p5 = scmp.lt.s32.totalorder %s398_s23, %s398_s23 }
   0xd   :  { %p405_p6 = por %p404_p5, %p403_p4 }
   0xf   :  { %p406_p7 = pnand %p405_p6, %p399_p3 }
  0x11   :  { %409 = shalt.err (!%p406_p7)
}
  0x12   :  { %30 = dma.hbm_to_vmem [thread:$0]  %s619_s1, 128, %s28_s13, [#allocation6]  }
  0x13   :  { %s410_s28 = scalar_lea.hbm %s618_s0, 256 }
  0x14   :  { %p411_p8 = scmp.ne.s32.totalorder %s618_s0, %s410_s28  ;;  %p414_p9 = scmp.lt.u32.totalorder %s410_s28, %s618_s0 }
  0x16   :  { %p416_p10 = pnand %p414_p9, %p411_p8 }
  0x18   :  { %419 = shalt.err (!%p416_p10)
}
  0x19   :  { %s420_s6 = scalar_lea.vmem %s18_s15, 256  ;;  %p425_p12 = scmp.lt.s32.totalorder %s18_s15, %s18_s15 }
  0x1a   :  { %p421_p11 = scmp.ne.s32.totalorder %s18_s15, %s420_s6  ;;  %p426_p13 = scmp.lt.s32.totalorder %s420_s6, %s420_s6 }
  0x1c   :  { %p427_p0 = por %p426_p13, %p425_p12 }
  0x1e   :  { %p428_p1 = pnand %p427_p0, %p421_p11 }
  0x20   :  { %431 = shalt.err (!%p428_p1)
}
  0x21   :  { %20 = dma.hbm_to_vmem [thread:$0]  %s618_s0, 256, %s18_s15, [#allocation3]  }
  0x22   :  { %s484_s8 = smov [#allocation7]   ;;  %s432_s12 = scalar_lea.hbm %s620_s2, 128 }
  0x23   :  { %s37_s9 = sshll.u32 %s484_s8, 4  ;;  %p433_p2 = scmp.ne.s32.totalorder %s620_s2, %s432_s12  ;;  %s38_s9 = int_to_ptr.vmem [resolvable:$true] %s37_s9 }
  0x24   :  { %p436_p3 = scmp.lt.u32.totalorder %s432_s12, %s620_s2 }
  0x26   :  { %p438_p4 = pnand %p436_p3, %p433_p2 }
  0x28   :  { %441 = shalt.err (!%p438_p4)
}
  0x29   :  { %s442_s18 = scalar_lea.vmem %s38_s9, 128  ;;  %p447_p6 = scmp.lt.s32.totalorder %s38_s9, %s38_s9 }
  0x2a   :  { %p443_p5 = scmp.ne.s32.totalorder %s38_s9, %s442_s18  ;;  %p448_p7 = scmp.lt.s32.totalorder %s442_s18, %s442_s18 }
  0x2c   :  { %p449_p8 = por %p448_p7, %p447_p6 }
  0x2e   :  { %p450_p9 = pnand %p449_p8, %p443_p5 }
  0x30   :  { %453 = shalt.err (!%p450_p9)
}
  0x31   :  { %40 = dma.hbm_to_vmem [thread:$0]  %s620_s2, 128, %s38_s9, [#allocation6]  }
  0x32   :  { %476 = dma.done.wait [#allocation3], 256  }
  0x33   :  { %477 = vsyncadd [#allocation3], 4294967040 }
  0x34   :  { %478 = dma.done.wait [#allocation6], 256  }
  0x35   :  { %479 = vsyncadd [#allocation6], 4294967040  ;;  %v58_v0 = vlaneseq  ;;  %v485_v1 = vmov 1983009808   ;;  %v549_v6 = vld [vmem:[#allocation2] sm:$0xff]  ;;  %v551_v7 = vld [vmem:[#allocation2 + $0x8] sm:$0xff] }
  0x36   :  { %v56_v2 = vunpack.c.l.s4 %v485_v1  ;;  %v54_v8 = vcombine.high %v549_v6, %v549_v6  ;;  %vm96_vm0 = vcmask 1041408   ;;  %v71_v10 = vcombine.high %v551_v7, %v551_v7  ;;  %s487_s2 = smov [#allocation8]  }
  0x37   :  { %v544_v3 = vshrl.u32 %v58_v0, 7  ;;  %v114_v11 = vmul.f32 %v549_v6, %v549_v6  ;;  %v115_v16 = vmul.f32 %v551_v7, %v551_v7  ;;  %s366_s19 = sshll.u32 %s487_s2, 4  ;;  %s367_s19 = int_to_ptr.vmem [resolvable:$true] %s366_s19 }
  0x38   :  { %v57_v4 = vunpack.c.0.s8 %v56_v2  ;;  %s454_s20 = scalar_lea.vmem %s367_s19, 256  ;;  %p459_p11 = scmp.lt.s32.totalorder %s367_s19, %s367_s19 }
  0x39   :  { %v118_v17 = vcombine.high %v114_v11, %v114_v11  ;;  %v135_v28 = vcombine.high %v115_v16, %v115_v16  ;;  %p455_p10 = scmp.ne.s32.totalorder %s367_s19, %s454_s20  ;;  %p460_p12 = scmp.lt.s32.totalorder %s454_s20, %s454_s20 }
  0x3a   :  { %v547_v5 = vsub.s32 %v57_v4, %v544_v3 }
  0x3b   :  { %p461_p13 = por %p460_p12, %p459_p11 }
  0x3c   :  { %v61_v9 = vrot.slane %v549_v6, %v547_v5  ;;  %v68_v12 = vrot.slane %v54_v8, %v547_v5  ;;  %v78_v14 = vrot.slane %v551_v7, %v547_v5  ;;  %v125_v18 = vrot.slane %v114_v11, %v547_v5 }
  0x3d   :  { %v85_v22 = vrot.slane %v71_v10, %v547_v5  ;;  %v132_v24 = vrot.slane %v118_v17, %v547_v5  ;;  %v142_v31 = vrot.slane %v115_v16, %v547_v5  ;;  %v149_v40 = vrot.slane %v135_v28, %v547_v5  ;;  %p462_p0 = pnand %p461_p13, %p455_p10 }
  0x3e   :  { %v69_v13 = vcombine.high %v61_v9, %v61_v9  ;;  %v97_v15 = vsel %vm96_vm0, %v61_v9, 0.0  ;;  %v70_v19 = vcombine.high %v68_v12, %v68_v12  ;;  %v100_v21 = vsel %vm96_vm0, %v68_v12, 0.0 }
  0x3f   :  { %v86_v25 = vcombine.high %v78_v14, %v78_v14  ;;  %v133_v27 = vcombine.high %v125_v18, %v125_v18  ;;  %v134_v30 = vcombine.high %v132_v24, %v132_v24  ;;  %v160_v32 = vsel %vm96_vm0, %v125_v18, 0.0 }
  0x40   :  { %v98_v20 = vsel %vm96_vm0, %v69_v13, 0.0  ;;  %v102_v26 = vsel %vm96_vm0, %v70_v19, 0.0  ;;  %v104_v33 = vsel %vm96_vm0, %v78_v14, 0.0  ;;  %v163_v35 = vsel %vm96_vm0, %v132_v24, 0.0  ;;  %v214_v14 = vld [vmem:[#allocation5] sm:$0xff] }
  0x41   :  { %v99_v23 = vadd.f32 %v98_v20, %v97_v15  ;;  %v161_v34 = vsel %vm96_vm0, %v133_v27, 0.0  ;;  %v87_v36 = vcombine.high %v85_v22, %v85_v22  ;;  %v106_v39 = vsel %vm96_vm0, %v86_v25, 0.0 }
  0x42   :  { %v162_v38 = vadd.f32 %v161_v34, %v160_v32  ;;  %v150_v41 = vcombine.high %v142_v31, %v142_v31  ;;  %v165_v42 = vsel %vm96_vm0, %v134_v30, 0.0  ;;  %v108_v45 = vsel %vm96_vm0, %v85_v22, 0.0  ;;  %v286_v22 = vld [vmem:[#allocation7] sm:$0xff] }
  0x43   :  { %v101_v29 = vadd.f32 %v100_v21, %v99_v23  ;;  %v167_v46 = vsel %vm96_vm0, %v142_v31, 0.0  ;;  %v110_v49 = vsel %vm96_vm0, %v87_v36, 0.0  ;;  %v151_v50 = vcombine.high %v149_v40, %v149_v40 }
  0x44   :  { %v164_v44 = vadd.f32 %v163_v35, %v162_v38  ;;  %v169_v51 = vsel %vm96_vm0, %v150_v41, 0.0  ;;  %v171_v54 = vsel %vm96_vm0, %v149_v40, 0.0  ;;  %v486_v8 = vmov 269488144  }
  0x45   :  { %v103_v37 = vadd.f32 %v102_v26, %v101_v29  ;;  %v173_v57 = vsel %vm96_vm0, %v151_v50, 0.0  ;;  %v194_v9 = vunpack.c.l.s4 %v486_v8  ;;  %v218_v10 = vsub.s32 0, %v544_v3 }
  0x46   :  { %v166_v48 = vadd.f32 %v165_v42, %v164_v44  ;;  %v222_v11 = vsub.s32 1, %v544_v3  ;;  %v226_v12 = vsub.s32 2, %v544_v3  ;;  %v230_v15 = vsub.s32 3, %v544_v3 }
  0x47   :  { %v105_v43 = vadd.f32 %v104_v33, %v103_v37  ;;  %v234_v16 = vsub.s32 4, %v544_v3  ;;  %v238_v17 = vsub.s32 5, %v544_v3  ;;  %v242_v19 = vsub.s32 6, %v544_v3 }
  0x48   :  { %v168_v53 = vadd.f32 %v167_v46, %v166_v48  ;;  %v246_v20 = vsub.s32 7, %v544_v3  ;;  %v195_v23 = vunpack.c.0.s8 %v194_v9  ;;  %v219_v25 = vrot.slane %v214_v14, %v218_v10 }
  0x49   :  { %v107_v47 = vadd.f32 %v106_v39, %v105_v43  ;;  %v223_v26 = vrot.slane %v214_v14, %v222_v11  ;;  %v227_v28 = vrot.slane %v214_v14, %v226_v12  ;;  %v231_v29 = vrot.slane %v214_v14, %v230_v15 }
  0x4a   :  { %v170_v56 = vadd.f32 %v169_v51, %v168_v53  ;;  %v235_v30 = vrot.slane %v214_v14, %v234_v16  ;;  %v239_v31 = vrot.slane %v214_v14, %v238_v17  ;;  %v243_v32 = vrot.slane %v214_v14, %v242_v19 }
  0x4b   :  { %v109_v52 = vadd.f32 %v108_v45, %v107_v47  ;;  %v247_v33 = vrot.slane %v214_v14, %v246_v20  ;;  %v291_v34 = vrot.slane %v286_v22, %v218_v10  ;;  %v295_v35 = vrot.slane %v286_v22, %v222_v11 }
  0x4c   :  { %v172_v58 = vadd.f32 %v171_v54, %v170_v56  ;;  %v299_v36 = vrot.slane %v286_v22, %v226_v12  ;;  %v303_v37 = vrot.slane %v286_v22, %v230_v15  ;;  %v307_v38 = vrot.slane %v286_v22, %v234_v16 }
  0x4d   :  { %v111_v55 = vadd.f32 %v110_v49, %v109_v52  ;;  %v311_v39 = vrot.slane %v286_v22, %v238_v17  ;;  %v315_v40 = vrot.slane %v286_v22, %v242_v19  ;;  %v319_v41 = vrot.slane %v286_v22, %v246_v20 }
  0x4e   :  { %v174_v59 = vadd.f32 %v173_v57, %v172_v58  ;;  %v248_v42 = vcombine.low %v219_v25, %v223_v26  ;;  %v249_v43 = vcombine.low %v227_v28, %v231_v29  ;;  %v198_v44 = vsub.s32 %v195_v23, %v544_v3 }
  0x4f   :  { %112 = vadd.xlane.f32.xlu0 %v111_v55  ;;  %v265_v45 = vcombine.low %v235_v30, %v239_v31  ;;  %v266_v46 = vcombine.low %v243_v32, %v247_v33  ;;  %v320_v47 = vcombine.low %v291_v34, %v295_v35  ;;  %v321_v48 = vcombine.low %v299_v36, %v303_v37 }
  0x50   :  { %v337_v49 = vcombine.low %v307_v38, %v311_v39  ;;  %v338_v50 = vcombine.low %v315_v40, %v319_v41  ;;  %v256_v51 = vrot.slane %v248_v42, %v547_v5  ;;  %v263_v52 = vrot.slane %v249_v43, %v547_v5 }
  0x51   :  { %v273_v54 = vrot.slane %v265_v45, %v547_v5  ;;  %v280_v55 = vrot.slane %v266_v46, %v547_v5  ;;  %v328_v56 = vrot.slane %v320_v47, %v547_v5  ;;  %v335_v57 = vrot.slane %v321_v48, %v547_v5 }
  0x52   :  { %v345_v3 = vrot.slane %v337_v49, %v547_v5  ;;  %v352_v58 = vrot.slane %v338_v50, %v547_v5 }
  0x53   :  { %175 = vadd.xlane.f32.xlu0 %v174_v59 }
  0x54   :  { %v353_v8 = vcombine.low %v345_v3, %v352_v58 }
  0xdc   :  { %v113_v60 = vpop.xlane.xlu0 %112 }
  0xdd   :  { %v177_v61 = vmul.f32 0.0009765625, %v113_v60 }
  0xdf   :  { %v178_v62 = vmul.f32 %v177_v61, %v113_v60  ;;  %v199_v53 = vrot.slane %v177_v61, %v198_v44  ;;  %v264_v60 = vcombine.low %v256_v51, %v263_v52  ;;  %v281_v61 = vcombine.low %v273_v54, %v280_v55 }
  0xe0   :  { %v176_v63 = vpop.xlane.xlu0 %175 }
  0xe1   :  { %v179_v0 = vsub.f32 %v176_v63, %v178_v62  ;;  %v201_v62 = vsub.f32 %v549_v6, %v199_v53  ;;  %v202_v63 = vsub.f32 %v551_v7, %v199_v53 }
  0xe3   :  { %v180_v1 = vmul.f32 0.0009775171, %v179_v0 }
  0xe5   :  { %v181_v2 = vmax.f32 %v180_v1, 0.0 }
  0xe7   :  { %384 = vrsqrt.f32 %v181_v2  ;;  %vm184_vm1 = vcmp.eq.f32.partialorder %v181_v2, inf  ;;  %v187_v18 = vand.u32 2147483648, %v181_v2  ;;  %vm186_vm2 = vcmp.eq.f32.partialorder %v181_v2, 0.0 }
  0xf1   :  { %v385_v4 = vpop.eup %384 }
  0xf2   :  { %v183_v13 = vmul.f32 %v385_v4, %v181_v2  ;;  %v336_v4 = vcombine.low %v328_v56, %v335_v57 }
  0xf4   :  { %v185_v21 = vsel %vm184_vm1, %v181_v2, %v183_v13 }
  0xf5   :  { %v188_v24 = vsel %vm186_vm2, %v187_v18, %v185_v21 }
  0xf6   :  { %v189_v27 = vadd.f32 1e-05, %v188_v24 }
  0xf8   :  { %386 = vrcp.f32 %v189_v27 }
 0x102   :  { %v387_v59 = vpop.eup %386 }
 0x103   :  { %v210_v0 = vrot.slane %v387_v59, %v198_v44 }
 0x105   :  { %v212_v1 = vmul.f32 %v210_v0, %v201_v62  ;;  %v213_v2 = vmul.f32 %v210_v0, %v202_v63 }
 0x107   :  { %v284_v9 = vmul.f32 %v264_v60, %v212_v1  ;;  %v285_v10 = vmul.f32 %v281_v61, %v213_v2 }
 0x109   :  { %v356_v11 = vadd.f32 %v336_v4, %v284_v9  ;;  %v357_v12 = vadd.f32 %v353_v8, %v285_v10 }
 0x10b   :  { %358 = vst [vmem:[#allocation8] sm:$0xff] %v356_v11  ;;  %359 = vst [vmem:[#allocation8 + $0x8] sm:$0xff] %v357_v12 }
 0x10c   :  { %465 = shalt.err (!%p462_p0)
}
 0x10d   :  { %s466_s23 = scalar_lea.hbm %s621_s3, 256 }
 0x10e   :  { %p467_p1 = scmp.ne.s32.totalorder %s621_s3, %s466_s23  ;;  %p470_p2 = scmp.lt.u32.totalorder %s466_s23, %s621_s3 }
 0x110   :  { %p472_p3 = pnand %p470_p2, %p467_p1 }
 0x112   :  { %475 = shalt.err (!%p472_p3)
}
 0x113   :  { %369 = dma.vmem_to_hbm [thread:$0]  %s367_s19, 256, %s621_s3, [#allocation4]  }
 0x114   :  { %480 = dma.done.wait [#allocation4], 256  }
 0x115   :  { %481 = vsyncadd [#allocation4], 4294967040 }
 0x116   :  { %373 = vsyncpa [#allocation3], 1 }
 0x117   :  { %374 = vsyncpa [#allocation6], 1 }
 0x118   :  { %375 = vsyncpa [#allocation4], 1 }

</bundles_post_ra>
